<compile_context>
chip_gen: v7x
topology: tpu7x:2x2x1
jax: 0.10.0
libtpu: 0.0.40
codegen_flags: <defaults>
</compile_context>

<pallas_src>
import jax
import jax.numpy as jnp
from jax.experimental import pallas as pl
from jax.experimental.pallas import tpu as pltpu


def _round_up(x, m):
    return (x + m - 1) // m * m


def _vmem_cap_bytes():
    """Generation-aware usable-VMEM cap (leave ~15% headroom for Mosaic)."""
    try:
        cap = int(pltpu.get_tpu_info().vmem_capacity_bytes)
    except Exception:  # pragma: no cover - conservative fallback
        cap = 64 << 20
    return max(32 << 20, int(cap * 0.85))


# ---------------------------------------------------------------------------
# Kernels
# ---------------------------------------------------------------------------

def _ffn_kernel_onepass(x_ref, w1_ref, b1_ref, w2_ref, b2_ref, o_ref):
    """Whole d_ff in one step: y = relu(x @ W1 + b1) @ W2 + b2."""
    h = jnp.dot(x_ref[...], w1_ref[...], preferred_element_type=jnp.float32)
    h = jnp.maximum(h + b1_ref[...], 0.0)
    y = jnp.dot(h.astype(w2_ref.dtype), w2_ref[...],
                preferred_element_type=jnp.float32)
    o_ref[...] = (y + b2_ref[...]).astype(o_ref.dtype)


def _ffn_kernel_ksplit_f32out(x_ref, w1_ref, b1_ref, w2_ref, b2_ref, o_ref):
    """d_ff split over grid axis 1; accumulate directly into the resident f32
    output block (no separate scratch, no final copy)."""
    k = pl.program_id(1)

    @pl.when(k == 0)
    def _():
        o_ref[...] = jnp.broadcast_to(b2_ref[...], o_ref.shape)

    h = jnp.dot(x_ref[...], w1_ref[...], preferred_element_type=jnp.float32)
    h = jnp.maximum(h + b1_ref[...], 0.0)
    o_ref[...] += jnp.dot(h.astype(w2_ref.dtype), w2_ref[...],
                          preferred_element_type=jnp.float32)


def _ffn_kernel_ksplit_scratch(x_ref, w1_ref, b1_ref, w2_ref, b2_ref, o_ref,
                               acc_ref):
    """d_ff split over grid axis 1; f32 VMEM accumulator, cast on last step
    (used when the output dtype is narrower than f32)."""
    k = pl.program_id(1)

    @pl.when(k == 0)
    def _():
        acc_ref[...] = jnp.zeros_like(acc_ref)

    h = jnp.dot(x_ref[...], w1_ref[...], preferred_element_type=jnp.float32)
    h = jnp.maximum(h + b1_ref[...], 0.0)
    acc_ref[...] += jnp.dot(h.astype(w2_ref.dtype), w2_ref[...],
                            preferred_element_type=jnp.float32)

    @pl.when(k == pl.num_programs(1) - 1)
    def _():
        o_ref[...] = (acc_ref[...] + b2_ref[...]).astype(o_ref.dtype)


# ---------------------------------------------------------------------------
# Wrapper
# ---------------------------------------------------------------------------

def pointwise_feed_forward(x, w1, b1, w2, b2, *, tile_m=512, max_tile_f=None,
                           compute_dtype=jnp.bfloat16):
    """x: (B, S, d_model) -> (B, S, d_model).  y = relu(x@W1+b1)@W2 + b2."""
    B, S, D = x.shape
    D_ff = w1.shape[1]
    out_dtype = x.dtype
    M = B * S

    csize = jnp.dtype(compute_dtype).itemsize
    osize = jnp.dtype(out_dtype).itemsize
    f32size = 4

    Dp = _round_up(D, 128)
    Fp_full = _round_up(D_ff, 128)
    vmem_cap = _vmem_cap_bytes()

    # --- row-tile selection ---------------------------------------------------
    # Arithmetic intensity of this kernel is ~tile_m FLOPs per weight byte, so
    # tile_m is the lever that makes the kernel MXU-bound rather than HBM-bound.
    tile_m = min(int(tile_m), _round_up(M, 16))
    tile_m = max(16, _round_up(tile_m, 16))
    # Megacore / multi-TC: keep >=2 row tiles when rows allow, so the
    # "parallel" axis can be split across TensorCores.
    while tile_m > 256 and _round_up(M, tile_m) // tile_m < 2:
        tile_m = _round_up(tile_m // 2, 16)

    # --- d_ff tile: collapse the reduction axis when weights fit ---------------
    if max_tile_f is None:
        tile_f = Fp_full
    else:
        tile_f = min(_round_up(int(max_tile_f), 128), Fp_full)

    def _budget(tm, tf):
        ksplit = tf < Fp_full
        b = 2 * (tm * Dp * csize          # x tile (double-buffered)
                 + Dp * tf * csize        # W1 chunk
                 + tf * f32size           # b1 chunk
                 + tf * Dp * csize        # W2 chunk
                 + Dp * f32size           # b2
                 + tm * Dp * osize)       # out tile
        b += tm * tf * (f32size + csize)  # h intermediate (f32 + bf16 copy)
        if ksplit and out_dtype != jnp.float32:
            b += tm * Dp * f32size        # accumulator scratch
        return int(b * 1.15) + (2 << 20)  # Mosaic internal scratch headroom

    # Shrink tile_f first (AI depends only on tile_m), then tile_m, until the
    # working set fits the generation-aware VMEM cap.
    while _budget(tile_m, tile_f) > vmem_cap and tile_f > 256:
        tile_f = _round_up(tile_f // 2, 128)
    while _budget(tile_m, tile_f) > vmem_cap and tile_m > 128:
        tile_m = max(128, _round_up(tile_m // 2, 16))

    Mp = _round_up(M, tile_m)
    Fp = _round_up(D_ff, tile_f)
    num_row_tiles = Mp // tile_m
    ksplit = (Fp // tile_f) > 1

    # --- padding / casting (skipped when already aligned) ----------------------
    # Zero-padding is exact: padded x cols / W1 rows / W2 rows / biases are
    # zero, so padded hidden units are relu(0)=0 and contribute nothing; padded
    # output rows/cols are sliced off below.
    x2d = x.reshape(M, D).astype(compute_dtype)
    if (Mp, Dp) != (M, D):
        x2d = jnp.pad(x2d, ((0, Mp - M), (0, Dp - D)))

    w1p = w1.astype(compute_dtype)
    if (Dp, Fp) != (D, D_ff):
        w1p = jnp.pad(w1p, ((0, Dp - D), (0, Fp - D_ff)))

    w2p = w2.astype(compute_dtype)
    if (Fp, Dp) != (D_ff, D):
        w2p = jnp.pad(w2p, ((0, Fp - D_ff), (0, Dp - D)))

    b1p = b1.reshape(1, D_ff).astype(jnp.float32)
    if Fp != D_ff:
        b1p = jnp.pad(b1p, ((0, 0), (0, Fp - D_ff)))

    b2p = b2.reshape(1, D).astype(jnp.float32)
    if Dp != D:
        b2p = jnp.pad(b2p, ((0, 0), (0, Dp - D)))

    # --- cost estimate & VMEM limit --------------------------------------------
    cost = pl.CostEstimate(
        flops=4 * Mp * Dp * Fp,                       # two matmuls
        transcendentals=0,
        bytes_accessed=(Mp * Dp * csize               # x read once
                        + num_row_tiles * 2 * Dp * Fp * csize  # W1+W2 per row tile
                        + Fp * f32size + Dp * f32size # biases
                        + Mp * Dp * osize))           # output write
    vmem_limit = min(vmem_cap, max(32 << 20, _budget(tile_m, tile_f)))

    compiler_params_1d = pltpu.CompilerParams(
        dimension_semantics=("parallel",), vmem_limit_bytes=vmem_limit)
    compiler_params_2d = pltpu.CompilerParams(
        dimension_semantics=("parallel", "arbitrary"),
        vmem_limit_bytes=vmem_limit)

    if not ksplit:
        # Single pass: whole d_ff resident, no accumulator, no per-step overhead.
        out2d = pl.pallas_call(
            _ffn_kernel_onepass,
            out_shape=jax.ShapeDtypeStruct((Mp, Dp), out_dtype),
            grid_spec=pltpu.PrefetchScalarGridSpec(
                num_scalar_prefetch=0,
                grid=(num_row_tiles,),
                in_specs=[
                    pl.BlockSpec((tile_m, Dp), lambda i: (i, 0)),  # x rows
                    pl.BlockSpec((Dp, Fp), lambda i: (0, 0)),      # W1
                    pl.BlockSpec((1, Fp), lambda i: (0, 0)),       # b1
                    pl.BlockSpec((Fp, Dp), lambda i: (0, 0)),      # W2
                    pl.BlockSpec((1, Dp), lambda i: (0, 0)),       # b2
                ],
                out_specs=pl.BlockSpec((tile_m, Dp), lambda i: (i, 0)),
            ),
            compiler_params=compiler_params_1d,
            cost_estimate=cost,
        )(x2d, w1p, b1p, w2p, b2p)
    else:
        in_specs = [
            pl.BlockSpec((tile_m, Dp), lambda i, k: (i, 0)),   # x rows
            pl.BlockSpec((Dp, tile_f), lambda i, k: (0, k)),   # W1 d_ff chunk
            pl.BlockSpec((1, tile_f), lambda i, k: (0, k)),    # b1 chunk
            pl.BlockSpec((tile_f, Dp), lambda i, k: (k, 0)),   # W2 d_ff chunk
            pl.BlockSpec((1, Dp), lambda i, k: (0, 0)),        # b2
        ]
        out_spec = pl.BlockSpec((tile_m, Dp), lambda i, k: (i, 0))
        if out_dtype == jnp.float32:
            kernel = _ffn_kernel_ksplit_f32out
            scratch = []
        else:
            kernel = _ffn_kernel_ksplit_scratch
            scratch = [pltpu.VMEM((tile_m, Dp), jnp.float32)]
        out2d = pl.pallas_call(
            kernel,
            out_shape=jax.ShapeDtypeStruct((Mp, Dp), out_dtype),
            grid_spec=pltpu.PrefetchScalarGridSpec(
                num_scalar_prefetch=0,
                grid=(num_row_tiles, Fp // tile_f),
                in_specs=in_specs,
                out_specs=out_spec,
                scratch_shapes=scratch,
            ),
            compiler_params=compiler_params_2d,
            cost_estimate=cost,
        )(x2d, w1p, b1p, w2p, b2p)

    return out2d[:M, :D].reshape(B, S, D)


# ---------------------------------------------------------------------------
# Reference & tests
# ---------------------------------------------------------------------------

def _reference(x, w1, b1, w2, b2, compute_dtype=jnp.bfloat16):
    # Numerics matched to the kernel: bf16 matmul operands, f32 accumulation.
    xc = x.astype(compute_dtype)
    w1c = w1.astype(compute_dtype)
    w2c = w2.astype(compute_dtype)
    h = jnp.einsum("bsd,df->bsf", xc, w1c, preferred_element_type=jnp.float32)
    h = jnp.maximum(h + b1.astype(jnp.float32), 0.0)
    y = jnp.einsum("bsf,fd->bsd", h.astype(compute_dtype), w2c,
                   preferred_element_type=jnp.float32)
    return (y + b2.astype(jnp.float32)).astype(x.dtype)


def _run_case(key, B, S, D, D_FF, *, max_tile_f=None, x_dtype=jnp.float32,
              atol=2e-2, rtol=2e-2):
    kx, k1, k2, k3, k4 = jax.random.split(key, 5)
    x = jax.random.normal(kx, (B, S, D), dtype=jnp.float32).astype(x_dtype)
    w1 = jax.random.normal(k1, (D, D_FF), dtype=jnp.float32) / jnp.sqrt(D)
    b1 = jax.random.normal(k2, (D_FF,), dtype=jnp.float32) * 0.01
    w2 = jax.random.normal(k3, (D_FF, D), dtype=jnp.float32) / jnp.sqrt(D_FF)
    b2 = jax.random.normal(k4, (D,), dtype=jnp.float32) * 0.01

    out = pointwise_feed_forward(x, w1, b1, w2, b2, max_tile_f=max_tile_f)
    out = jax.block_until_ready(out)

    ref = _reference(x, w1, b1, w2, b2)
    assert out.shape == (B, S, D)
    assert out.dtype == x.dtype
    of = out.astype(jnp.float32)
    rf = ref.astype(jnp.float32)
    err = float(jnp.max(jnp.abs(of - rf)))
    assert jnp.allclose(of, rf, atol=atol, rtol=rtol), (
        f"mismatch vs reference (max abs err {err})")


if __name__ == "__main__":
    key = jax.random.PRNGKey(0)
    k_a, k_b, k_c, k_d = jax.random.split(key, 4)

    # 1) lane-aligned small case -> single-pass path (k axis collapsed).
    _run_case(k_a, B=2, S=8, D=128, D_FF=256)
    # 2) unaligned case exercising the row/feature padding paths.
    _run_case(k_b, B=2, S=5, D=96, D_FF=200)
    # 3) forced d_ff split -> f32 output accumulated in place (no scratch).
    _run_case(k_c, B=2, S=8, D=128, D_FF=512, max_tile_f=128)
    # 4) forced d_ff split with bf16 input/output -> f32 scratch accumulator path.
    _run_case(k_d, B=2, S=8, D=128, D_FF=512, max_tile_f=128,
              x_dtype=jnp.bfloat16, atol=6e-2, rtol=6e-2)

    print("KERNEL_OK")
</pallas_src>

<mosaic_0001>
module attributes {stable_mosaic.version = 11 : i64} {
  func.func @_ffn_kernel_onepass(%arg0: i32, %arg1: memref<16x128xbf16, #tpu.memory_space<vmem>>, %arg2: memref<128x256xbf16, #tpu.memory_space<vmem>>, %arg3: memref<1x256xf32, #tpu.memory_space<vmem>>, %arg4: memref<256x128xbf16, #tpu.memory_space<vmem>>, %arg5: memref<1x128xf32, #tpu.memory_space<vmem>>, %arg6: memref<16x128xf32, #tpu.memory_space<vmem>>) attributes {dimension_semantics = [#tpu.dimension_semantics<parallel>], iteration_bounds = array<i64: 1>, scalar_prefetch = 0 : i64, scratch_operands = 0 : i64, tpu.core_type = #tpu.core_type<tc>, window_params = [{transform_indices = @transform_0, window_bounds = array<i64: 16, 128>}, {pipeline_mode = #tpu.pipeline_mode<synchronous>, transform_indices = @transform_1, window_bounds = array<i64: 128, 256>}, {pipeline_mode = #tpu.pipeline_mode<synchronous>, transform_indices = @transform_2, window_bounds = array<i64: 1, 256>}, {pipeline_mode = #tpu.pipeline_mode<synchronous>, transform_indices = @transform_3, window_bounds = array<i64: 256, 128>}, {pipeline_mode = #tpu.pipeline_mode<synchronous>, transform_indices = @transform_4, window_bounds = array<i64: 1, 128>}, {transform_indices = @transform_5, window_bounds = array<i64: 16, 128>}]} {
    %c0 = arith.constant 0 : index
    %c0_0 = arith.constant 0 : index
    %0 = vector.load %arg1[%c0, %c0_0] : memref<16x128xbf16, #tpu.memory_space<vmem>>, vector<16x128xbf16>
    %c0_1 = arith.constant 0 : index
    %c0_2 = arith.constant 0 : index
    %1 = vector.load %arg2[%c0_1, %c0_2] : memref<128x256xbf16, #tpu.memory_space<vmem>>, vector<128x256xbf16>
    %cst = arith.constant dense<0.000000e+00> : vector<16x256xf32>
    %2 = tpu.matmul %0, %1, %cst {dimension_numbers = #tpu.dot_dimension_numbers<[1], [0], [0], [1], [0, 0, 1, 1], [], []>} : vector<16x128xbf16>, vector<128x256xbf16>, vector<16x256xf32> -> vector<16x256xf32>
    %c0_3 = arith.constant 0 : index
    %c0_4 = arith.constant 0 : index
    %3 = vector.load %arg3[%c0_3, %c0_4] : memref<1x256xf32, #tpu.memory_space<vmem>>, vector<1x256xf32>
    %4 = vector.broadcast %3 : vector<1x256xf32> to vector<16x256xf32>
    %5 = arith.addf %2, %4 : vector<16x256xf32>
    %cst_5 = arith.constant 0.000000e+00 : f32
    %6 = vector.broadcast %cst_5 : f32 to vector<16x256xf32>
    %7 = arith.maximumf %5, %6 : vector<16x256xf32>
    %8 = arith.truncf %7 : vector<16x256xf32> to vector<16x256xbf16>
    %c0_6 = arith.constant 0 : index
    %c0_7 = arith.constant 0 : index
    %9 = vector.load %arg4[%c0_6, %c0_7] : memref<256x128xbf16, #tpu.memory_space<vmem>>, vector<256x128xbf16>
    %cst_8 = arith.constant dense<0.000000e+00> : vector<16x128xf32>
    %10 = tpu.matmul %8, %9, %cst_8 {dimension_numbers = #tpu.dot_dimension_numbers<[1], [0], [0], [1], [0, 0, 1, 1], [], []>} : vector<16x256xbf16>, vector<256x128xbf16>, vector<16x128xf32> -> vector<16x128xf32>
    %c0_9 = arith.constant 0 : index
    %c0_10 = arith.constant 0 : index
    %11 = vector.load %arg5[%c0_9, %c0_10] : memref<1x128xf32, #tpu.memory_space<vmem>>, vector<1x128xf32>
    %12 = vector.broadcast %11 : vector<1x128xf32> to vector<16x128xf32>
    %13 = arith.addf %10, %12 : vector<16x128xf32>
    %c0_11 = arith.constant 0 : index
    %c0_12 = arith.constant 0 : index
    %14 = vector.load %arg6[%c0_11, %c0_12] : memref<16x128xf32, #tpu.memory_space<vmem>>, vector<16x128xf32>
    tpu.vector_store %arg6[%c0_11, %c0_12], %13 {strides = array<i32>} : memref<16x128xf32, #tpu.memory_space<vmem>>, vector<16x128xf32>,
    return
  }
  func.func @transform_0(%arg0: i32) -> (i32, i32) {
    %c0_i32 = arith.constant 0 : i32
    %c0_i32_0 = arith.constant 0 : i32
    return %arg0, %c0_i32 : i32, i32
  }
  func.func @transform_1(%arg0: i32) -> (i32, i32) {
    %c0_i32 = arith.constant 0 : i32
    %c0_i32_0 = arith.constant 0 : i32
    %c0_i32_1 = arith.constant 0 : i32
    return %c0_i32, %c0_i32_0 : i32, i32
  }
  func.func @transform_2(%arg0: i32) -> (i32, i32) {
    %c0_i32 = arith.constant 0 : i32
    %c0_i32_0 = arith.constant 0 : i32
    %c0_i32_1 = arith.constant 0 : i32
    return %c0_i32, %c0_i32_0 : i32, i32
  }
  func.func @transform_3(%arg0: i32) -> (i32, i32) {
    %c0_i32 = arith.constant 0 : i32
    %c0_i32_0 = arith.constant 0 : i32
    %c0_i32_1 = arith.constant 0 : i32
    return %c0_i32, %c0_i32_0 : i32, i32
  }
  func.func @transform_4(%arg0: i32) -> (i32, i32) {
    %c0_i32 = arith.constant 0 : i32
    %c0_i32_0 = arith.constant 0 : i32
    %c0_i32_1 = arith.constant 0 : i32
    return %c0_i32, %c0_i32_0 : i32, i32
  }
  func.func @transform_5(%arg0: i32) -> (i32, i32) {
    %c0_i32 = arith.constant 0 : i32
    %c0_i32_0 = arith.constant 0 : i32
    return %arg0, %c0_i32 : i32, i32
  }
}

</mosaic_0001>

<bundles_post_ra>
// kernel: tpu_custom_call.1
= control target key start
LH: loop header
LB: loop body
LE: loop exit
PB: predicated region body
PF: predicated region fallthrough
CT: control target
= control target key end

     0   :  { %10 = vsyncpa [#allocation3], 0  ;;  %s723_s0 = inlined_call_operand.hbm [shape: bf16[16,128], index: 0, kind: input, shape index: {}]   ;;  %s724_s1 = inlined_call_operand.hbm [shape: bf16[128,256], index: 1, kind: input, shape index: {}]   ;;  %s725_s2 = inlined_call_operand.vmem [shape: f32[1,256], index: 2, kind: input, shape index: {}]   ;;  %s726_s3 = inlined_call_operand.hbm [shape: bf16[256,128], index: 3, kind: input, shape index: {}]   ;;  %s727_s4 = inlined_call_operand.vmem [shape: f32[1,128], index: 4, kind: input, shape index: {}]   ;;  %s728_s5 = inlined_call_operand.hbm [shape: f32[16,128], index: 5, kind: output, shape index: {}]  }
   0x1   :  { %11 = vsyncpa [#allocation6], 0 }
   0x2   :  { %12 = vsyncpa [#allocation4], 0  ;;  %s624_s18 = smov [#allocation5]   ;;  %s530_s22 = scalar_lea.hbm %s724_s1, 2048 }
   0x3   :  { %s30_s19 = sshll.u32 %s624_s18, 4  ;;  %p531_p0 = scmp.ne.s32.totalorder %s724_s1, %s530_s22  ;;  %s31_s19 = int_to_ptr.vmem [resolvable:$true] %s30_s19 }
   0x4   :  { %p534_p1 = scmp.lt.u32.totalorder %s530_s22, %s724_s1 }
   0x6   :  { %p536_p2 = pnand %p534_p1, %p531_p0 }
   0x8   :  { %539 = shalt.err (!%p536_p2)
}
   0x9   :  { %s540_s27 = scalar_lea.vmem %s31_s19, 2048  ;;  %p545_p4 = scmp.lt.s32.totalorder %s31_s19, %s31_s19 }
   0xa   :  { %p541_p3 = scmp.ne.s32.totalorder %s31_s19, %s540_s27  ;;  %p546_p5 = scmp.lt.s32.totalorder %s540_s27, %s540_s27 }
   0xc   :  { %p547_p6 = por %p546_p5, %p545_p4 }
   0xe   :  { %p548_p7 = pnand %p547_p6, %p541_p3 }
  0x10   :  { %551 = shalt.err (!%p548_p7)
}
  0x11   :  { %s625_s28 = smov 128   ;;  %s626_s29 = smov 8  }
  0x12   :  { %36 = dma.hbm_to_vmem [thread:$0]  %s724_s1, 2048, %s31_s19, [#allocation6], %s625_s28, %s625_s28, %s626_s29  }
  0x13   :  { %s627_s7 = smov [#allocation2]   ;;  %s552_s11 = scalar_lea.hbm %s723_s0, 128 }
  0x14   :  { %s18_s8 = sshll.u32 %s627_s7, 4  ;;  %p553_p8 = scmp.ne.s32.totalorder %s723_s0, %s552_s11  ;;  %s19_s8 = int_to_ptr.vmem [resolvable:$true] %s18_s8 }
  0x15   :  { %p556_p9 = scmp.lt.u32.totalorder %s552_s11, %s723_s0 }
  0x17   :  { %p558_p10 = pnand %p556_p9, %p553_p8 }
  0x19   :  { %561 = shalt.err (!%p558_p10)
}
  0x1a   :  { %s562_s16 = scalar_lea.vmem %s19_s8, 128  ;;  %p567_p12 = scmp.lt.s32.totalorder %s19_s8, %s19_s8 }
  0x1b   :  { %p563_p11 = scmp.ne.s32.totalorder %s19_s8, %s562_s16  ;;  %p568_p13 = scmp.lt.s32.totalorder %s562_s16, %s562_s16 }
  0x1d   :  { %p569_p0 = por %p568_p13, %p567_p12 }
  0x1f   :  { %p570_p1 = pnand %p569_p0, %p563_p11 }
  0x21   :  { %573 = shalt.err (!%p570_p1)
}
  0x22   :  { %s628_s1 = smov 64   ;;  %s629_s17 = smov 4  }
  0x23   :  { %24 = dma.hbm_to_vmem [thread:$0]  %s723_s0, 128, %s19_s8, [#allocation3], %s628_s1, %s628_s1, %s629_s17  }
  0x24   :  { %s630_s20 = smov [#allocation7]   ;;  %s574_s24 = scalar_lea.hbm %s726_s3, 2048 }
  0x25   :  { %s44_s21 = sshll.u32 %s630_s20, 4  ;;  %p575_p2 = scmp.ne.s32.totalorder %s726_s3, %s574_s24  ;;  %s45_s21 = int_to_ptr.vmem [resolvable:$true] %s44_s21 }
  0x26   :  { %p578_p3 = scmp.lt.u32.totalorder %s574_s24, %s726_s3 }
  0x28   :  { %p580_p4 = pnand %p578_p3, %p575_p2 }
  0x2a   :  { %583 = shalt.err (!%p580_p4)
}
  0x2b   :  { %s584_s6 = scalar_lea.vmem %s45_s21, 2048  ;;  %p589_p6 = scmp.lt.s32.totalorder %s45_s21, %s45_s21 }
  0x2c   :  { %p585_p5 = scmp.ne.s32.totalorder %s45_s21, %s584_s6  ;;  %p590_p7 = scmp.lt.s32.totalorder %s584_s6, %s584_s6 }
  0x2e   :  { %p591_p8 = por %p590_p7, %p589_p6 }
  0x30   :  { %p592_p9 = pnand %p591_p8, %p585_p5 }
  0x32   :  { %595 = shalt.err (!%p592_p9)
}
  0x33   :  { %50 = dma.hbm_to_vmem [thread:$0]  %s726_s3, 2048, %s45_s21, [#allocation6], %s628_s1, %s628_s1, %s629_s17  }
  0x34   :  { %618 = dma.done.wait [#allocation3], 128  }
  0x35   :  { %619 = vsyncadd [#allocation3], 4294967168 }
  0x36   :  { %620 = dma.done.wait [#allocation6], 4096  }
  0x37   :  { %621 = vsyncadd [#allocation6], 4294963200  ;;  %v631_v0 = vmov 0   ;;  %v489_v1 = vld [vmem:[#allocation5 + $0x4] ss:$8 sps:$4 sm:$0xff]   ;;  %v518_v16 = vld [vmem:[#allocation7 + $0x50] sm:$0xff]   ;;  %v83_v34 = vlaneseq }
  0x38   :  { %211 = vmatprep.mubr.bf16.mxu0 %v631_v0  ;;  %v491_v2 = vld [vmem:[#allocation5] ss:$8 sps:$4 sm:$0xff]   ;;  %179 = vmatprep.subr.bf16.mxu0 %v489_v1  ;;  %v492_v3 = vld [vmem:[#allocation5 + $0x14] ss:$8 sps:$4 sm:$0xff]   ;;  %v494_v4 = vld [vmem:[#allocation5 + $0x10] ss:$8 sps:$4 sm:$0xff]  }
  0x39   :  { %180 = vmatpush1.bf16.msra.mxu0 %v491_v2  ;;  %v495_v5 = vld [vmem:[#allocation5 + $0x24] ss:$8 sps:$4 sm:$0xff]   ;;  %v497_v6 = vld [vmem:[#allocation5 + $0x20] ss:$8 sps:$4 sm:$0xff]   ;;  %v498_v7 = vld [vmem:[#allocation5 + $0x34] ss:$8 sps:$4 sm:$0xff]  }
  0x3a   :  { %181 = vmatprep.subr.bf16.mxu0 %v492_v3  ;;  %v500_v8 = vld [vmem:[#allocation5 + $0x30] ss:$8 sps:$4 sm:$0xff]   ;;  %v501_v9 = vld [vmem:[#allocation5 + $0x44] ss:$8 sps:$4 sm:$0xff]   ;;  %v503_v11 = vld [vmem:[#allocation5 + $0x40] ss:$8 sps:$4 sm:$0xff]  }
  0x3b   :  { %v514_v10 = vld [vmem:[#allocation7 + $0x40] sm:$0xff]   ;;  %v504_v13 = vld [vmem:[#allocation5 + $0x54] ss:$8 sps:$4 sm:$0xff]   ;;  %v516_v14 = vld [vmem:[#allocation7 + $0x48] sm:$0xff]   ;;  %v84_v35 = vshrl.u32 %v83_v34, 7  ;;  %s632_s10 = smov [#allocation8]  }
  0x3c   :  { %v515_v12 = vld [vmem:[#allocation7] sm:$0xff]   ;;  %458 = vmatprep.subr.bf16.mxu1 %v514_v10  ;;  %v517_v15 = vld [vmem:[#allocation7 + $0x8] sm:$0xff]   ;;  %v506_v17 = vld [vmem:[#allocation5 + $0x50] ss:$8 sps:$4 sm:$0xff]   ;;  %s411_s11 = sshll.u32 %s632_s10, 4  ;;  %s412_s11 = int_to_ptr.vmem [resolvable:$true] %s411_s11 }
  0x3d   :  { %182 = vmatpush1.bf16.msra.mxu0 %v494_v4  ;;  %459 = vmatpush3.bf16.msra.mxu1 %v515_v12  ;;  %v507_v18 = vld [vmem:[#allocation5 + $0x64] ss:$8 sps:$4 sm:$0xff]   ;;  %v519_v19 = vld [vmem:[#allocation7 + $0x10] sm:$0xff]   ;;  %v520_v20 = vld [vmem:[#allocation7 + $0x58] sm:$0xff]   ;;  %v85_v36 = vsub.s32 0, %v84_v35  ;;  %v89_v38 = vsub.s32 1, %v84_v35  ;;  %p601_p11 = scmp.lt.s32.totalorder %s412_s11, %s412_s11 }
  0x3e   :  { %183 = vmatprep.subr.bf16.mxu0 %v495_v5  ;;  %460 = vmatprep.subr.bf16.mxu1 %v516_v14  ;;  %v509_v21 = vld [vmem:[#allocation5 + $0x60] ss:$8 sps:$4 sm:$0xff]   ;;  %v510_v22 = vld [vmem:[#allocation5 + $0x74] ss:$8 sps:$4 sm:$0xff]   ;;  %v512_v25 = vld [vmem:[#allocation5 + $0x70] ss:$8 sps:$4 sm:$0xff]  }
  0x3f   :  { %v521_v23 = vld [vmem:[#allocation7 + $0x18] sm:$0xff]   ;;  %v522_v24 = vld [vmem:[#allocation7 + $0x60] sm:$0xff]   ;;  %v524_v27 = vld [vmem:[#allocation7 + $0x68] sm:$0xff]   ;;  %s596_s12 = scalar_lea.vmem %s412_s11, 256 }
  0x40   :  { %v523_v26 = vld [vmem:[#allocation7 + $0x20] sm:$0xff]   ;;  %v513_v28 = vld [vmem:[#allocation2] sm:$0xff]   ;;  %v525_v29 = vld [vmem:[#allocation7 + $0x28] sm:$0xff]   ;;  %p597_p10 = scmp.ne.s32.totalorder %s412_s11, %s596_s12  ;;  %p602_p12 = scmp.lt.s32.totalorder %s596_s12, %s596_s12 }
  0x41   :  { %184 = vmatpush1.bf16.msra.mxu0 %v497_v6  ;;  %461 = vmatpush3.bf16.msra.mxu1 %v517_v15  ;;  %v526_v30 = vld [vmem:[#allocation7 + $0x70] sm:$0xff]   ;;  %v528_v32 = vld [vmem:[#allocation7 + $0x78] sm:$0xff]  }
  0x42   :  { %185 = vmatprep.subr.bf16.mxu0 %v498_v7  ;;  %462 = vmatprep.subr.bf16.mxu1 %v518_v16  ;;  %v527_v31 = vld [vmem:[#allocation7 + $0x30] sm:$0xff]   ;;  %v529_v33 = vld [vmem:[#allocation7 + $0x38] sm:$0xff]   ;;  %p603_p13 = por %p602_p12, %p601_p11 }
  0x43   :  { %v81_v37 = vld [vmem:[%s725_s2] sm:$0x3] }
  0x44   :  { %v86_v39 = vrot.slane %v81_v37, %v85_v36  ;;  %v90_v40 = vrot.slane %v81_v37, %v89_v38  ;;  %v441_v56 = vld [vmem:[%s727_s4] ss:$0 sm:$0xff]  ;;  %p604_p0 = pnand %p603_p13, %p597_p10 }
  0x45   :  { %186 = vmatpush1.bf16.msra.mxu0 %v500_v8  ;;  %463 = vmatpush3.bf16.msra.mxu1 %v519_v19 }
  0x46   :  { %187 = vmatprep.subr.bf16.mxu0 %v501_v9  ;;  %464 = vmatprep.subr.bf16.mxu1 %v520_v20 }
  0x49   :  { %188 = vmatpush1.bf16.msra.mxu0 %v503_v11  ;;  %465 = vmatpush3.bf16.msra.mxu1 %v521_v23 }
  0x4a   :  { %189 = vmatprep.subr.bf16.mxu0 %v504_v13  ;;  %466 = vmatprep.subr.bf16.mxu1 %v522_v24 }
  0x4d   :  { %190 = vmatpush1.bf16.msra.mxu0 %v506_v17  ;;  %467 = vmatpush3.bf16.msra.mxu1 %v523_v26 }
  0x4e   :  { %191 = vmatprep.subr.bf16.mxu0 %v507_v18  ;;  %468 = vmatprep.subr.bf16.mxu1 %v524_v27 }
  0x51   :  { %192 = vmatpush1.bf16.msra.mxu0 %v509_v21  ;;  %469 = vmatpush3.bf16.msra.mxu1 %v525_v29 }
  0x52   :  { %193 = vmatprep.subr.bf16.mxu0 %v510_v22  ;;  %470 = vmatprep.subr.bf16.mxu1 %v526_v30 }
  0x55   :  { %194 = vmatpush1.bf16.msra.mxu0 %v512_v25  ;;  %471 = vmatpush3.bf16.msra.mxu1 %v527_v31 }
  0x56   :  { %472 = vmatprep.subr.bf16.mxu1 %v528_v32 }
  0x58   :  { %212 = vmatmul.mubr.bf16.vlgmr.msra.gmra.mrb[0].mxu0 %v513_v28 }
  0x59   :  { %473 = vmatpush3.bf16.msra.mxu1 %v529_v33 }
 0x12b   :  { %v213_v41 = vpop.f32.mrb[0].mxu0 }
 0x12c   :  { %v214_v42 = vadd.f32 %v213_v41, %v86_v39  ;;  %v215_v43 = vpop.f32.mrb[1].mxu0 }
 0x12d   :  { %v216_v44 = vadd.f32 %v215_v43, %v90_v40  ;;  %v217_v45 = vpop.f32.mrb[2].mxu0 }
 0x12e   :  { %v218_v46 = vadd.f32 %v217_v45, %v86_v39  ;;  %v219_v47 = vpop.f32.mrb[3].mxu0  ;;  %v222_v49 = vmax.f32 %v214_v42, 0.0 }
 0x12f   :  { %v220_v48 = vadd.f32 %v219_v47, %v90_v40  ;;  %v223_v51 = vmax.f32 %v216_v44, 0.0 }
 0x130   :  { %v224_v50 = vmax.f32 %v218_v46, 0.0 }
 0x131   :  { %v225_v52 = vmax.f32 %v220_v48, 0.0 }
 0x132   :  { %v226_v53 = vpack.c.bf16 %v224_v50, %v222_v49 }
 0x133   :  { %v227_v54 = vpack.c.bf16 %v225_v52, %v223_v51 }
 0x135   :  { %395 = vmatprep.mubr.bf16.mxu1 %v227_v54 }
 0x136   :  { %396 = vmatmul.mubr.bf16.vlgmr.msra.gmra.mrb[0].mxu1 %v226_v53 }
 0x209   :  { %v474_v55 = vpop.f32.mrb[0].mxu1 }
 0x20a   :  { %v475_v57 = vpop.f32.mrb[1].mxu1 }
 0x20b   :  { %v476_v58 = vadd.f32 %v475_v57, %v474_v55  ;;  %v477_v59 = vpop.f32.mrb[2].mxu1 }
 0x20c   :  { %v478_v60 = vpop.f32.mrb[3].mxu1 }
 0x20d   :  { %v398_v61 = vadd.f32 %v476_v58, %v441_v56  ;;  %v479_v62 = vadd.f32 %v478_v60, %v477_v59 }
 0x20f   :  { %404 = vst [vmem:[#allocation8] sm:$0xff] %v398_v61  ;;  %v401_v63 = vadd.f32 %v479_v62, %v441_v56 }
 0x211   :  { %405 = vst [vmem:[#allocation8 + $0x8] sm:$0xff] %v401_v63 }
 0x212   :  { %607 = shalt.err (!%p604_p0)
}
 0x213   :  { %s608_s14 = scalar_lea.hbm %s728_s5, 256 }
 0x214   :  { %p609_p1 = scmp.ne.s32.totalorder %s728_s5, %s608_s14  ;;  %p612_p2 = scmp.lt.u32.totalorder %s608_s14, %s728_s5 }
 0x216   :  { %p614_p3 = pnand %p612_p2, %p609_p1 }
 0x218   :  { %617 = shalt.err (!%p614_p3)
}
 0x219   :  { %417 = dma.vmem_to_hbm [thread:$0]  %s412_s11, 256, %s728_s5, [#allocation4], %s625_s28, %s625_s28, %s626_s29  }
 0x21a   :  { %622 = dma.done.wait [#allocation4], 256  }
 0x21b   :  { %623 = vsyncadd [#allocation4], 4294967040 }
 0x21c   :  { %421 = vsyncpa [#allocation3], 1 }
 0x21d   :  { %422 = vsyncpa [#allocation6], 1 }
 0x21e   :  { %423 = vsyncpa [#allocation4], 1 }

</bundles_post_ra>
